<compile_context>
chip_gen: v6e
topology: v6e:2x2x1
jax: 0.10.0
libtpu: 0.0.40
codegen_flags: <defaults>
</compile_context>

<pallas_src>
import functools

import jax
import jax.numpy as jnp
from jax import lax
from jax.experimental import pallas as pl
from jax.experimental.pallas import tpu as pltpu


def _round_up(x: int, m: int) -> int:
    return ((x + m - 1) // m) * m


def _nnls_kernel(x_ref, w_ref, o_ref, acc_ref):
    """One (tm, tn) output tile, accumulated over the K grid axis.

    x_ref  : (tm, tk) input tile
    w_ref  : (tn, tk) weight tile in PyTorch (out_dim, in_dim) layout
    o_ref  : (tm, tn) output tile
    acc_ref: (tm, tn) f32 VMEM accumulator (resident across the K axis)
    """

    @pl.when(pl.program_id(2) == 0)
    def _():
        acc_ref[...] = jnp.zeros_like(acc_ref)

    # out += x @ W^T, contracting the last dim of both operands so no HBM
    # transpose of the weight is ever materialized.
    acc_ref[...] += lax.dot_general(
        x_ref[...],
        w_ref[...],
        dimension_numbers=(((1,), (1,)), ((), ())),
        preferred_element_type=jnp.float32,
    )

    @pl.when(pl.program_id(2) == pl.num_programs(2) - 1)
    def _():
        o_ref[...] = acc_ref[...].astype(o_ref.dtype)


@functools.partial(jax.jit, static_argnames=("tm", "tn", "tk"))
def nnls_forward(x: jax.Array, weight: jax.Array, *, tm: int = 256,
                 tn: int = 256, tk: int = 512) -> jax.Array:
    """Forward pass of NNLS: linear projection with no bias.

    x      : (N, in_dim)
    weight : (out_dim, in_dim)  -- PyTorch nn.Linear convention (not transposed)
    returns: (N, out_dim)
    """
    n, k = x.shape
    out_dim, k_w = weight.shape
    assert k == k_w, "weight/input dim mismatch"

    # Clamp tiles for small problems while keeping (8, 128) alignment; tn is
    # always a multiple of 128 so the output slab is lane-dense.
    tm = min(tm, _round_up(n, 8))
    tn = min(tn, _round_up(out_dim, 128))
    tk = min(tk, _round_up(k, 128))

    pad_n = _round_up(n, tm)
    pad_o = _round_up(out_dim, tn)
    pad_k = _round_up(k, tk)

    # Zero-pad ragged edges only when needed (zeros contribute nothing along
    # K; padded output rows/cols are sliced off below).
    if (pad_n, pad_k) != (n, k):
        x = jnp.pad(x, ((0, pad_n - n), (0, pad_k - k)))
    if (pad_o, pad_k) != (out_dim, k_w):
        weight = jnp.pad(weight, ((0, pad_o - out_dim), (0, pad_k - k_w)))

    grid = (pad_n // tm, pad_o // tn, pad_k // tk)

    out_padded = pl.pallas_call(
        _nnls_kernel,
        out_shape=jax.ShapeDtypeStruct((pad_n, pad_o), x.dtype),
        grid_spec=pltpu.PrefetchScalarGridSpec(
            num_scalar_prefetch=0,
            grid=grid,
            in_specs=[
                pl.BlockSpec((tm, tk), lambda i, j, kk: (i, kk)),
                pl.BlockSpec((tn, tk), lambda i, j, kk: (j, kk)),
            ],
            out_specs=pl.BlockSpec((tm, tn), lambda i, j, kk: (i, j)),
            scratch_shapes=[pltpu.VMEM((tm, tn), jnp.float32)],
        ),
        compiler_params=pltpu.CompilerParams(
            dimension_semantics=("parallel", "parallel", "arbitrary"),
        ),
    )(x, weight)

    if (pad_n, pad_o) == (n, out_dim):
        return out_padded
    return out_padded[:n, :out_dim]


if __name__ == "__main__":
    key = jax.random.PRNGKey(0)

    # --- Small shapes consistent with NNLS(in_dim, out_dim): a batch of spots
    # projected from in_dim genes to out_dim cell types. --------------------
    N, IN_DIM, OUT_DIM = 8, 32, 16
    kx, kw, kx2, kw2 = jax.random.split(key, 4)

    x = jax.random.normal(kx, (N, IN_DIM), dtype=jnp.float32)
    # nn.Linear default init: U(-1/sqrt(in_dim), 1/sqrt(in_dim)); bias=False.
    bound = 1.0 / float(IN_DIM) ** 0.5
    weight = jax.random.uniform(
        kw, (OUT_DIM, IN_DIM), dtype=jnp.float32, minval=-bound, maxval=bound
    )
    # TODO(synk): fit() training loop (Adam + MSE + weight clamping to >=0) is
    # host-side training, not part of the forward pass, and is not a kernel.

    out = nnls_forward(x, weight)
    jax.block_until_ready(out)
    ref = x @ weight.T
    assert out.shape == (N, OUT_DIM)
    assert jnp.allclose(out, ref, atol=5e-3, rtol=5e-3)

    # --- A slightly larger ragged case to exercise the tiled/padded path. ---
    N2, IN2, OUT2 = 520, 700, 130
    x2 = jax.random.normal(kx2, (N2, IN2), dtype=jnp.float32)
    bound2 = 1.0 / float(IN2) ** 0.5
    w2 = jax.random.uniform(
        kw2, (OUT2, IN2), dtype=jnp.float32, minval=-bound2, maxval=bound2
    )
    out2 = nnls_forward(x2, w2)
    jax.block_until_ready(out2)
    ref2 = x2 @ w2.T
    assert out2.shape == (N2, OUT2)
    assert jnp.allclose(out2, ref2, atol=5e-3, rtol=5e-3)

    # --- An aligned case that skips padding entirely (no extra HBM copy). ---
    N3, IN3, OUT3 = 512, 1024, 256
    x3 = jax.random.normal(kx, (N3, IN3), dtype=jnp.float32)
    w3 = jax.random.uniform(
        kw, (OUT3, IN3), dtype=jnp.float32,
        minval=-1.0 / float(IN3) ** 0.5, maxval=1.0 / float(IN3) ** 0.5,
    )
    out3 = nnls_forward(x3, w3)
    jax.block_until_ready(out3)
    ref3 = x3 @ w3.T
    assert out3.shape == (N3, OUT3)
    assert jnp.allclose(out3, ref3, atol=5e-3, rtol=5e-3)

    print("KERNEL_OK")
</pallas_src>

<mosaic_0001>
module attributes {stable_mosaic.version = 11 : i64} {
  func.func @_nnls_kernel(%arg0: i32, %arg1: i32, %arg2: i32, %arg3: memref<8x128xf32, #tpu.memory_space<vmem>>, %arg4: memref<128x128xf32, #tpu.memory_space<vmem>>, %arg5: memref<8x128xf32, #tpu.memory_space<vmem>>, %arg6: memref<8x128xf32, #tpu.memory_space<vmem>>) attributes {dimension_semantics = [#tpu.dimension_semantics<parallel>, #tpu.dimension_semantics<parallel>, #tpu.dimension_semantics<arbitrary>], iteration_bounds = array<i64: 1, 1, 1>, scalar_prefetch = 0 : i64, scratch_operands = 1 : i64, tpu.core_type = #tpu.core_type<tc>, window_params = [{transform_indices = @transform_0, window_bounds = array<i64: 8, 128>}, {transform_indices = @transform_1, window_bounds = array<i64: 128, 128>}, {transform_indices = @transform_2, window_bounds = array<i64: 8, 128>}]} {
    %c0_i32 = arith.constant 0 : i32
    %0 = arith.cmpi eq, %arg2, %c0_i32 : i32
    %1 = arith.extui %0 : i1 to i32
    %c0_i32_0 = arith.constant 0 : i32
    %2 = arith.cmpi ne, %1, %c0_i32_0 : i32
    scf.if %2 {
      %cst_10 = arith.constant 0.000000e+00 : f32
      %12 = vector.broadcast %cst_10 : f32 to vector<8x128xf32>
      %c0_11 = arith.constant 0 : index
      %c0_12 = arith.constant 0 : index
      %13 = vector.load %arg6[%c0_11, %c0_12] : memref<8x128xf32, #tpu.memory_space<vmem>>, vector<8x128xf32>
      tpu.vector_store %arg6[%c0_11, %c0_12], %12 {strides = array<i32>} : memref<8x128xf32, #tpu.memory_space<vmem>>, vector<8x128xf32>,
    } else {
    }
    %c0 = arith.constant 0 : index
    %c0_1 = arith.constant 0 : index
    %3 = vector.load %arg6[%c0, %c0_1] : memref<8x128xf32, #tpu.memory_space<vmem>>, vector<8x128xf32>
    %c0_2 = arith.constant 0 : index
    %c0_3 = arith.constant 0 : index
    %4 = vector.load %arg3[%c0_2, %c0_3] : memref<8x128xf32, #tpu.memory_space<vmem>>, vector<8x128xf32>
    %c0_4 = arith.constant 0 : index
    %c0_5 = arith.constant 0 : index
    %5 = vector.load %arg4[%c0_4, %c0_5] : memref<128x128xf32, #tpu.memory_space<vmem>>, vector<128x128xf32>
    %cst = arith.constant dense<0.000000e+00> : vector<8x128xf32>
    %6 = tpu.matmul %4, %5, %cst {dimension_numbers = #tpu.dot_dimension_numbers<[1], [1], [0], [0], [0, 0, 1, 0], [], []>} : vector<8x128xf32>, vector<128x128xf32>, vector<8x128xf32> -> vector<8x128xf32>
    %7 = arith.addf %3, %6 : vector<8x128xf32>
    %c0_6 = arith.constant 0 : index
    %c0_7 = arith.constant 0 : index
    %8 = vector.load %arg6[%c0_6, %c0_7] : memref<8x128xf32, #tpu.memory_space<vmem>>, vector<8x128xf32>
    tpu.vector_store %arg6[%c0_6, %c0_7], %7 {strides = array<i32>} : memref<8x128xf32, #tpu.memory_space<vmem>>, vector<8x128xf32>,
    %c0_i32_8 = arith.constant 0 : i32
    %9 = arith.cmpi eq, %arg2, %c0_i32_8 : i32
    %10 = arith.extui %9 : i1 to i32
    %c0_i32_9 = arith.constant 0 : i32
    %11 = arith.cmpi ne, %10, %c0_i32_9 : i32
    scf.if %11 {
      %c0_10 = arith.constant 0 : index
      %c0_11 = arith.constant 0 : index
      %12 = vector.load %arg6[%c0_10, %c0_11] : memref<8x128xf32, #tpu.memory_space<vmem>>, vector<8x128xf32>
      %c0_12 = arith.constant 0 : index
      %c0_13 = arith.constant 0 : index
      %13 = vector.load %arg5[%c0_12, %c0_13] : memref<8x128xf32, #tpu.memory_space<vmem>>, vector<8x128xf32>
      tpu.vector_store %arg5[%c0_12, %c0_13], %12 {strides = array<i32>} : memref<8x128xf32, #tpu.memory_space<vmem>>, vector<8x128xf32>,
    } else {
    }
    return
  }
  func.func @transform_0(%arg0: i32, %arg1: i32, %arg2: i32) -> (i32, i32) {
    %c0_i32 = arith.constant 0 : i32
    return %arg0, %arg2 : i32, i32
  }
  func.func @transform_1(%arg0: i32, %arg1: i32, %arg2: i32) -> (i32, i32) {
    %c0_i32 = arith.constant 0 : i32
    return %arg1, %arg2 : i32, i32
  }
  func.func @transform_2(%arg0: i32, %arg1: i32, %arg2: i32) -> (i32, i32) {
    %c0_i32 = arith.constant 0 : i32
    return %arg0, %arg1 : i32, i32
  }
}

</mosaic_0001>

<bundles_post_ra>
// kernel: nnls_forward.1
= control target key start
LH: loop header
LB: loop body
LE: loop exit
PB: predicated region body
PF: predicated region fallthrough
CT: control target
= control target key end

     0   :  { %v203_v1 = vmov 0.0   ;;  %vm204_vm0 = vmmov 0   ;;  %s275_s0 = inlined_call_operand.vmem [shape: f32[8,128], index: 0, kind: input, shape index: {}]   ;;  %s276_s1 = inlined_call_operand.vmem [shape: f32[128,128], index: 1, kind: input, shape index: {}]   ;;  %s277_s2 = inlined_call_operand.hbm [shape: f32[8,128], index: 2, kind: output, shape index: {}]  }
   0x1   :  { %v34_v0 = vld [vmem:[%s276_s1 + $0x78] sm:$0xff]  ;;  %143 = vmatprep.subr.mxu0 %v203_v1  ;;  %175 = vmatprep.mubr.msk.f32.mxu0 %vm204_vm0, %v203_v1  ;;  %v33_v2 = vld [vmem:[%s276_s1 + $0x70] sm:$0xff] }
   0x2   :  { %144 = vmatpush3.xpose.msra.mxu0 %v34_v0 }
   0x3   :  { %145 = vmatprep.subr.mxu0 %v203_v1 }
   0x4   :  { %7 = vsyncpa [#allocation4], 0  ;;  %v32_v3 = vld [vmem:[%s276_s1 + $0x68] sm:$0xff]  ;;  %v31_v4 = vld [vmem:[%s276_s1 + $0x60] sm:$0xff]  ;;  %s205_s15 = smov [#allocation3]  }
   0x5   :  { %v30_v5 = vld [vmem:[%s276_s1 + $0x58] sm:$0xff]  ;;  %v29_v6 = vld [vmem:[%s276_s1 + $0x50] sm:$0xff]  ;;  %v28_v7 = vld [vmem:[%s276_s1 + $0x48] sm:$0xff]  ;;  %s118_s16 = sshll.u32 %s205_s15, 4  ;;  %s119_s16 = int_to_ptr.vmem [resolvable:$true] %s118_s16 }
   0x6   :  { %146 = vmatpush3.xpose.msra.mxu0 %v33_v2  ;;  %v27_v8 = vld [vmem:[%s276_s1 + $0x40] sm:$0xff]  ;;  %v26_v9 = vld [vmem:[%s276_s1 + $0x38] sm:$0xff]  ;;  %v25_v10 = vld [vmem:[%s276_s1 + $0x30] sm:$0xff]  ;;  %s181_s17 = scalar_lea.vmem %s119_s16, 128  ;;  %p186_p1 = scmp.lt.s32.totalorder %s119_s16, %s119_s16 }
   0x7   :  { %147 = vmatprep.subr.mxu0 %v203_v1  ;;  %v24_v11 = vld [vmem:[%s276_s1 + $0x28] sm:$0xff]  ;;  %v23_v12 = vld [vmem:[%s276_s1 + $0x20] sm:$0xff]  ;;  %v22_v13 = vld [vmem:[%s276_s1 + $0x18] sm:$0xff]  ;;  %p182_p0 = scmp.ne.s32.totalorder %s119_s16, %s181_s17  ;;  %p187_p2 = scmp.lt.s32.totalorder %s181_s17, %s181_s17 }
   0x8   :  { %v21_v14 = vld [vmem:[%s276_s1 + $0x10] sm:$0xff]  ;;  %v20_v15 = vld [vmem:[%s276_s1 + $0x8] sm:$0xff]  ;;  %v19_v16 = vld [vmem:[%s276_s1] sm:$0xff] }
   0x9   :  { %v18_v17 = vld [vmem:[%s275_s0] sm:$0xff]  ;;  %p188_p3 = por %p187_p2, %p186_p1 }
   0xa   :  { %148 = vmatpush3.xpose.msra.mxu0 %v32_v3 }
   0xb   :  { %149 = vmatprep.subr.mxu0 %v203_v1  ;;  %p189_p4 = pnand %p188_p3, %p182_p0 }
   0xe   :  { %150 = vmatpush3.xpose.msra.mxu0 %v31_v4 }
   0xf   :  { %151 = vmatprep.subr.mxu0 %v203_v1 }
  0x12   :  { %152 = vmatpush3.xpose.msra.mxu0 %v30_v5 }
  0x13   :  { %153 = vmatprep.subr.mxu0 %v203_v1 }
  0x16   :  { %154 = vmatpush3.xpose.msra.mxu0 %v29_v6 }
  0x17   :  { %155 = vmatprep.subr.mxu0 %v203_v1 }
  0x1a   :  { %156 = vmatpush3.xpose.msra.mxu0 %v28_v7 }
  0x1b   :  { %157 = vmatprep.subr.mxu0 %v203_v1 }
  0x1e   :  { %158 = vmatpush3.xpose.msra.mxu0 %v27_v8 }
  0x1f   :  { %159 = vmatprep.subr.mxu0 %v203_v1 }
  0x22   :  { %160 = vmatpush3.xpose.msra.mxu0 %v26_v9 }
  0x23   :  { %161 = vmatprep.subr.mxu0 %v203_v1 }
  0x26   :  { %162 = vmatpush3.xpose.msra.mxu0 %v25_v10 }
  0x27   :  { %163 = vmatprep.subr.mxu0 %v203_v1 }
  0x2a   :  { %164 = vmatpush3.xpose.msra.mxu0 %v24_v11 }
  0x2b   :  { %165 = vmatprep.subr.mxu0 %v203_v1 }
  0x2e   :  { %166 = vmatpush3.xpose.msra.mxu0 %v23_v12 }
  0x2f   :  { %167 = vmatprep.subr.mxu0 %v203_v1 }
  0x32   :  { %168 = vmatpush3.xpose.msra.mxu0 %v22_v13 }
  0x33   :  { %169 = vmatprep.subr.mxu0 %v203_v1 }
  0x36   :  { %170 = vmatpush3.xpose.msra.mxu0 %v21_v14 }
  0x37   :  { %171 = vmatprep.subr.mxu0 %v203_v1 }
  0x3a   :  { %172 = vmatpush3.xpose.msra.mxu0 %v20_v15 }
  0x3b   :  { %173 = vmatprep.subr.mxu0 %v203_v1 }
  0x3e   :  { %174 = vmatpush3.xpose.msra.mxu0 %v19_v16 }
  0x41   :  { %176 = vmatmul.mubr.f32.vlgmr.msra.gmra.mxu0 %v18_v17 }
 0x101   :  { %v101_v18 = vpop.f32.mrf.mxu0 }
 0x102   :  { %111 = vst [vmem:[#allocation3] sm:$0xff] %v101_v18 }
 0x103   :  { %v177_v19 = vpop.f32.mrf.mxu0 }
 0x104   :  { %192 = shalt.err (!%p189_p4)
}
 0x105   :  { %121 = dma.vmem_to_hbm [thread:$0]  %s119_s16, 128, %s277_s2, [#allocation4]  }
 0x106   :  { %201 = dma.done.wait [#allocation4], 128  }
 0x107   :  { %202 = vsyncadd [#allocation4], 4294967168 }
 0x108   :  { %125 = vsyncpa [#allocation4], 1 }

</bundles_post_ra>
